<compile_context>
chip_gen: v6e
topology: v6e:2x2x1
jax: 0.10.0
libtpu: 0.0.40
codegen_flags: <defaults>
</compile_context>

<pallas_src>
import jax
import jax.numpy as jnp
from jax.experimental import pallas as pl
from jax.experimental.pallas import tpu as pltpu

# --- small shapes consistent with the module (in_channels=3, patch_size=8 preserved) ---
BATCH = 2
IN_CH = 3
IMG = 32                 # img_size (scaled down from 128)
PATCH = 8                # patch_size
EMB = 256                # emb_dim (scaled down from 1024; multiple of 128 -> lane dense)
GRID_P = IMG // PATCH
NPATCH = GRID_P * GRID_P          # 16 patches per image (multiple of 8 sublanes)
KDIM = IN_CH * PATCH * PATCH      # 192 unfolded features per patch


# --------------------------------------------------------------------------
# Kernel: per-batch patch projection   out = patches @ W + b   (fused matmul + bias)
# --------------------------------------------------------------------------
def _patch_embed_kernel(xp_ref, w_ref, b_ref, o_ref):
    # xp_ref: (1, NPATCH, KDIM) f32     w_ref: (KDIM, EMB) bf16
    # b_ref:  (1, EMB) f32              o_ref: (1, NPATCH, EMB) f32
    x_bf = xp_ref[0].astype(jnp.bfloat16)                 # VPU cast, feeds MXU directly
    acc = jnp.dot(x_bf, w_ref[...], preferred_element_type=jnp.float32)
    o_ref[0] = acc + b_ref[...]                           # f32 bias broadcast over rows


def patch_embedding(x_nchw, conv_w, conv_b):
    """Conv2d(k=s=PATCH) -> flatten(2) -> transpose(1,2), as unfold + fused Pallas matmul."""
    B = x_nchw.shape[0]
    p = PATCH

    # NCHW -> (B, N, C*p*p).  Pure layout transform; patch order (ph, pw) and within-patch
    # feature order (c, i, j) match Conv2d's flatten(2).transpose(1,2) semantics and
    # conv_w.reshape(EMB, C*p*p).
    xp = x_nchw.reshape(B, IN_CH, GRID_P, p, GRID_P, p)
    xp = xp.transpose(0, 2, 4, 1, 3, 5).reshape(B, NPATCH, KDIM)
    # TODO(synk): the NCHW->patch-row unfold itself stays in XLA; it is not expressible as
    # rectangular BlockSpec tiles without an in-kernel multi-axis transpose.

    # Weight: reshape is free (contiguous); transpose+cast fuse into one XLA op, giving the
    # MXU its preferred (K, E) bf16 RHS layout.  Patch rows stay f32 (cast in-kernel).
    w_bf = conv_w.reshape(EMB, KDIM).T.astype(jnp.bfloat16)      # (K, E)
    b2d = conv_b.reshape(1, EMB).astype(jnp.float32)

    return pl.pallas_call(
        _patch_embed_kernel,
        out_shape=jax.ShapeDtypeStruct((B, NPATCH, EMB), jnp.float32),
        grid=(B,),
        in_specs=[
            pl.BlockSpec((1, NPATCH, KDIM), lambda b: (b, 0, 0)),   # per-batch patch rows
            pl.BlockSpec((KDIM, EMB), lambda b: (0, 0)),            # weight, DMA'd once
            pl.BlockSpec((1, EMB), lambda b: (0, 0)),               # bias, DMA'd once
        ],
        out_specs=pl.BlockSpec((1, NPATCH, EMB), lambda b: (b, 0, 0)),
        compiler_params=pltpu.CompilerParams(
            dimension_semantics=("parallel",)),                     # v7x: one batch per TC
    )(xp, w_bf, b2d)


# --------------------------------------------------------------------------
# Pure-JAX f32 reference (module semantics) for correctness checking
# --------------------------------------------------------------------------
def patch_embedding_ref(x_nchw, conv_w, conv_b):
    B = x_nchw.shape[0]
    p = PATCH
    xp = x_nchw.reshape(B, IN_CH, GRID_P, p, GRID_P, p)
    xp = xp.transpose(0, 2, 4, 1, 3, 5).reshape(B, NPATCH, KDIM)
    w = conv_w.reshape(EMB, KDIM).T
    return xp @ w + conv_b[None, None, :]


if __name__ == "__main__":
    key = jax.random.PRNGKey(0)
    kx, kw, kb = jax.random.split(key, 3)
    x = jax.random.normal(kx, (BATCH, IN_CH, IMG, IMG), dtype=jnp.float32)
    conv_w = 0.02 * jax.random.normal(kw, (EMB, IN_CH, PATCH, PATCH), dtype=jnp.float32)
    conv_b = 0.02 * jax.random.normal(kb, (EMB,), dtype=jnp.float32)

    out = jax.block_until_ready(patch_embedding(x, conv_w, conv_b))
    ref = jax.block_until_ready(patch_embedding_ref(x, conv_w, conv_b))

    assert out.shape == (BATCH, NPATCH, EMB), out.shape
    max_err = float(jnp.max(jnp.abs(out - ref)))
    # bf16 MXU operands + f32 accumulation vs. full-f32 reference
    assert jnp.allclose(out, ref, rtol=2e-2, atol=2e-2), max_err
    print("KERNEL_OK")
</pallas_src>

<mosaic_0001>
module attributes {stable_mosaic.version = 11 : i64} {
  func.func @_patch_embed_kernel(%arg0: i32, %arg1: memref<1x16x192xf32, #tpu.memory_space<vmem>>, %arg2: memref<192x256xbf16, #tpu.memory_space<vmem>>, %arg3: memref<1x256xf32, #tpu.memory_space<vmem>>, %arg4: memref<1x16x256xf32, #tpu.memory_space<vmem>>) attributes {dimension_semantics = [#tpu.dimension_semantics<parallel>], iteration_bounds = array<i64: 2>, scalar_prefetch = 0 : i64, scratch_operands = 0 : i64, tpu.core_type = #tpu.core_type<tc>, window_params = [{transform_indices = @transform_0, window_bounds = array<i64: 1, 16, 192>}, {pipeline_mode = #tpu.pipeline_mode<synchronous>, transform_indices = @transform_1, window_bounds = array<i64: 192, 256>}, {pipeline_mode = #tpu.pipeline_mode<synchronous>, transform_indices = @transform_2, window_bounds = array<i64: 1, 256>}, {transform_indices = @transform_3, window_bounds = array<i64: 1, 16, 256>}]} {
    %c0 = arith.constant 0 : index
    %c0_0 = arith.constant 0 : index
    %c0_1 = arith.constant 0 : index
    %0 = vector.load %arg1[%c0, %c0_0, %c0_1] : memref<1x16x192xf32, #tpu.memory_space<vmem>>, vector<1x16x192xf32>
    %1 = vector.shape_cast %0 : vector<1x16x192xf32> to vector<16x192xf32>
    %2 = arith.truncf %1 : vector<16x192xf32> to vector<16x192xbf16>
    %c0_2 = arith.constant 0 : index
    %c0_3 = arith.constant 0 : index
    %3 = vector.load %arg2[%c0_2, %c0_3] : memref<192x256xbf16, #tpu.memory_space<vmem>>, vector<192x256xbf16>
    %cst = arith.constant dense<0.000000e+00> : vector<16x256xf32>
    %4 = tpu.matmul %2, %3, %cst {dimension_numbers = #tpu.dot_dimension_numbers<[1], [0], [0], [1], [0, 0, 1, 1], [], []>} : vector<16x192xbf16>, vector<192x256xbf16>, vector<16x256xf32> -> vector<16x256xf32>
    %c0_4 = arith.constant 0 : index
    %c0_5 = arith.constant 0 : index
    %5 = vector.load %arg3[%c0_4, %c0_5] : memref<1x256xf32, #tpu.memory_space<vmem>>, vector<1x256xf32>
    %6 = vector.broadcast %5 : vector<1x256xf32> to vector<16x256xf32>
    %7 = arith.addf %4, %6 : vector<16x256xf32>
    %c0_6 = arith.constant 0 : index
    %c0_7 = arith.constant 0 : index
    %c0_8 = arith.constant 0 : index
    %8 = vector.load %arg4[%c0_6, %c0_7, %c0_8] : memref<1x16x256xf32, #tpu.memory_space<vmem>>, vector<1x16x256xf32>
    %9 = vector.shape_cast %8 : vector<1x16x256xf32> to vector<16x256xf32>
    %10 = vector.shape_cast %7 : vector<16x256xf32> to vector<1x16x256xf32>
    tpu.vector_store %arg4[%c0_6, %c0_7, %c0_8], %10 {strides = array<i32>} : memref<1x16x256xf32, #tpu.memory_space<vmem>>, vector<1x16x256xf32>,
    return
  }
  func.func @transform_0(%arg0: i32) -> (i32, i32, i32) {
    %c0_i32 = arith.constant 0 : i32
    %c0_i32_0 = arith.constant 0 : i32
    %c0_i32_1 = arith.constant 0 : i32
    return %arg0, %c0_i32, %c0_i32_0 : i32, i32, i32
  }
  func.func @transform_1(%arg0: i32) -> (i32, i32) {
    %c0_i32 = arith.constant 0 : i32
    %c0_i32_0 = arith.constant 0 : i32
    %c0_i32_1 = arith.constant 0 : i32
    return %c0_i32, %c0_i32_0 : i32, i32
  }
  func.func @transform_2(%arg0: i32) -> (i32, i32) {
    %c0_i32 = arith.constant 0 : i32
    %c0_i32_0 = arith.constant 0 : i32
    %c0_i32_1 = arith.constant 0 : i32
    return %c0_i32, %c0_i32_0 : i32, i32
  }
  func.func @transform_3(%arg0: i32) -> (i32, i32, i32) {
    %c0_i32 = arith.constant 0 : i32
    %c0_i32_0 = arith.constant 0 : i32
    %c0_i32_1 = arith.constant 0 : i32
    return %arg0, %c0_i32, %c0_i32_0 : i32, i32, i32
  }
}

</mosaic_0001>

<bundles_post_ra>
// kernel: tpu_custom_call.1
= control target key start
LH: loop header
LB: loop body
LE: loop exit
PB: predicated region body
PF: predicated region fallthrough
CT: control target
= control target key end

     0   :  { %8 = vsyncpa [#allocation3], 0  ;;  %s1000_s0 = inlined_call_operand.hbm [shape: f32[2,16,192], index: 0, kind: input, shape index: {}]   ;;  %s1001_s1 = inlined_call_operand.hbm [shape: bf16[192,256], index: 1, kind: input, shape index: {}]   ;;  %s1002_s2 = inlined_call_operand.vmem [shape: f32[1,256], index: 2, kind: input, shape index: {}]   ;;  %s1003_s3 = inlined_call_operand.hbm [shape: f32[2,16,256], index: 3, kind: output, shape index: {}]  }
   0x1   :  { %10 = vsyncpa [#allocation3 + $0x1], 0 }
   0x2   :  { %11 = vsyncpa [#allocation6], 0 }
   0x3   :  { %12 = vsyncpa [#allocation4], 0 }
   0x4   :  { %14 = vsyncpa [#allocation4 + $0x1], 0  ;;  %s810_s12 = smov 0   ;;  %s812_s13 = smov 0  }
   0x5   :  { %s814_s14 = smov 0   ;;  %s816_s15 = smov 0  }
   0x6 LB: > { %s831_s16 = sadd.s32 4294967295, %s779_s15   ;;  %s515_s17 = sadd.s32 4294967294, %s779_s15   ;;  %s779_s15 = sphi %s816_s15, %s1025_s15   ;;  %s775_s14 = sphi %s814_s14, %s1024_s14   ;;  %s771_s13 = sphi %s812_s13, %s1023_s13   ;;  %s767_s12 = sphi %s810_s12, %s1022_s12  }
   0x7   : > { %p40_p0 = scmp.ne.s32.totalorder %s771_s13, %s767_s12  ;;  %p1004_p1 = scmp.eq.s32.totalorder %s831_s16, 0 }
   0x8   : > { %p112_p3 = scmp.eq.s32.totalorder %s515_s17, 1  ;;  %p516_p5 = scmp.ge.s32.totalorder %s779_s15, 1 }
   0x9   : > { %p840_p4 = por %p1004_p1, %p40_p0  ;;  %p119_p7 = scmp.lt.s32.totalorder %s779_s15, 3 }
   0xa   : > { %p845_p6 = por %p112_p3, %p40_p0  ;;  %s781_s21 = smov [#allocation5]  }
   0xb   : > { %s1008_s18 = scalar_select %p840_p4, 1, 0 }
   0xc   : > { %s1009_s19 = scalar_select %p845_p6, 1, 0 }
   0xd   : > { %p850_p8 = pnand %p516_p5, %p119_p7  ;;  %s131_s22 = sshll.u32 %s781_s21, 4  ;;  %s132_s22 = int_to_ptr.vmem [resolvable:$true] %s131_s22 }
   0xe   : > { %s864_s24 = sadd.s32 1, %s779_s15   ;;  %s27_s25 = sadd.s32 1, %s775_s14 }
   0xf   : > { %s1010_s20 = scalar_select %p850_p8, 1, 0 }
  0x10   : > { %p566_p9 = pneg %p850_p8  ;;  %s24_s26 = ssub.s32 %s779_s15, %s864_s24 }
  0x11   : > { %s668_s27 = scalar_lea.vmem %s132_s22, 3072  ;;  %p676_p5 = scmp.lt.s32.totalorder %s132_s22, %s132_s22 }
  0x12   : > { %p859_p11 = pnand %p566_p9, %p1004_p1  ;;  %p669_p13 = scmp.ne.s32.totalorder %s132_s22, %s668_s27 }
  0x13   : > { %p677_p7 = scmp.lt.s32.totalorder %s668_s27, %s668_s27 }
  0x14   : > { %p659_p12 = pneg %p859_p11 }
  0x15   : > { %p678_p10 = por %p677_p7, %p676_p5 }
  0x16   : > { %p671_p0 = pnand %p669_p13, %p659_p12 }
  0x18   : > { %p672_p3 = pneg %p671_p0 }
  0x1a   : > { %p679_p2 = pnand %p678_p10, %p672_p3 }
  0x1c   : > { %682 = shalt.err (!%p679_p2)
}
  0x1d   : > { %s782_s28 = smov 128   ;;  %s783_s29 = smov 8  }
  0x1e   : > { %569 = dma.hbm_to_vmem [thread:$0]  (!%p859_p11), %s1001_s1, 3072, %s132_s22, [#allocation6], %s782_s28, %s782_s28, %s783_s29  }
  0x1f   : > { %p25_p9 = scmp.eq.s32.totalorder %s24_s26, 0  ;;  %p34_p12 = scmp.ne.s32.totalorder %s775_s14, %s771_s13 }
  0x20   : > { %p35_p10 = scmp.eq.s32.totalorder %s779_s15, 0  ;;  %p579_p2 = scmp.lt.s32.totalorder %s779_s15, 2 }
  0x21   : > { %s881_s5 = scalar_select %p25_p9, %s775_s14, %s27_s25  }
  0x22   : > { %p36_p13 = por %p35_p10, %p34_p12  ;;  %p1012_p0 = scmp.eq.s32.totalorder %s831_s16, 1 }
  0x23   : > { %s148_s7 = sand.u32 1, %s775_s14   ;;  %s556_s8 = sshll.u32 %s779_s15, 9 }
  0x24   : > { %p885_p3 = por %p1012_p0, %p34_p12  ;;  %s519_s9 = sshll.u32 %s148_s7, 5 }
  0x25   : > { %s894_s17 = scalar_lea.hbm %s1000_s0, %s556_s8  ;;  %s152_s21 = scalar_lea.vmem [#allocation2], %s519_s9 }
  0x26   : > { %s1013_s6 = scalar_select %p885_p3, 1, 0 }
  0x27   : > { %s159_s22 = sshll.u32 %s152_s21, 4  ;;  %p896_p11 = pnand %p579_p2, %p36_p13  ;;  %s900_s22 = int_to_ptr.vmem [resolvable:$true] %s159_s22 }
  0x28   : > { %s902_s25 = scalar_lea.sflag [#allocation3], %s148_s7  ;;  %s683_s26 = scalar_lea.hbm %s894_s17, 512 }
  0x29   : > { %p684_p5 = scmp.ne.s32.totalorder %s894_s17, %s683_s26  ;;  %p685_p7 = pneg %p896_p11 }
  0x2a   : > { %s688_s29 = scalar_lea.hbm %s1000_s0, 1024  ;;  %p689_p10 = scmp.lt.s32.totalorder %s894_s17, %s1000_s0 }
  0x2b   : > { %p686_p9 = pnand %p685_p7, %p684_p5  ;;  %p690_p2 = scmp.lt.s32.totalorder %s688_s29, %s683_s26 }
  0x2d   : > { %p687_p12 = pneg %p686_p9  ;;  %p691_p13 = por %p690_p2, %p689_p10 }
  0x2f   : > { %p692_p0 = pnand %p691_p13, %p687_p12 }
  0x31   : > { %695 = shalt.err (!%p692_p0)
}
  0x32   : > { %s696_s7 = scalar_lea.vmem %s900_s22, 512  ;;  %s784_s8 = smov [#allocation2]  }
  0x33   : > { %p697_p1 = scmp.ne.s32.totalorder %s900_s22, %s696_s7  ;;  %s701_s9 = sshll.u32 %s784_s8, 4  ;;  %s702_s9 = int_to_ptr.vmem [resolvable:$false] %s701_s9 }
  0x34   : > { %s703_s10 = scalar_lea.vmem %s702_s9, 1024  ;;  %p704_p9 = scmp.lt.s32.totalorder %s900_s22, %s702_s9 }
  0x35   : > { %p699_p6 = pnand %p697_p1, %p685_p7  ;;  %p705_p3 = scmp.lt.s32.totalorder %s703_s10, %s696_s7 }
  0x37   : > { %p700_p5 = pneg %p699_p6  ;;  %p706_p4 = por %p705_p3, %p704_p9 }
  0x39   : > { %p707_p8 = pnand %p706_p4, %p700_p5 }
  0x3b   : > { %710 = shalt.err (!%p707_p8)
}
  0x3c   : > { %s785_s11 = smov 256   ;;  %s786_s21 = smov 16  }
  0x3d   : > { %573 = dma.hbm_to_vmem [thread:$0]  (!%p896_p11), %s894_s17, 512, %s900_s22, %s902_s25, %s785_s11, %s785_s11, %s786_s21  }
  0x3e   : > { %p1015_p1 = scmp.ne.s32.totalorder %s1010_s20, 0 }
  0x3f   : > { %s926_s26 = sand.u32 (!%p1015_p1), 1, %s771_s13   ;;  %p1016_p4 = scmp.ne.s32.totalorder (!%p1015_p1), %s1008_s18, 0 }
  0x40   : > { %171 = sbr.rel (%p1015_p1) target bundleno = 337 (0x151), region = 32  ;;  %s523_s27 = sshll.u32 (!%p1015_p1), %s926_s26, 5 }
  0x41   : > { %s174_s28 = scalar_lea.sflag (!%p1015_p1), [#allocation3], %s926_s26  ;;  %s932_s29 = scalar_lea.vmem (!%p1015_p1), [#allocation2], %s523_s27 }
  0x45   : > { %754 = dma.done.wait (%p1016_p4), %s174_s28, 512  }
  0x46   : > { %756 = vsyncadd (%p1016_p4), %s174_s28, 4294966784  ;;  %p1017_p6 = scmp.eq.s32.totalorder %s831_s16, 0 }
  0x48   : > { %758 = dma.done.wait (%p1017_p6), [#allocation6], 3072   ;;  %p1018_p8 = pmov %p1017_p6 }
  0x49   : > { %v621_v0 = vld [vmem:[#allocation5 + $0x74] ss:$8 sps:$4 sm:$0xff]   ;;  %v623_v1 = vld [vmem:[#allocation5 + $0x70] ss:$8 sps:$4 sm:$0xff]   ;;  %v624_v2 = vld [vmem:[#allocation5 + $0x64] ss:$8 sps:$4 sm:$0xff]   ;;  %v237_v30 = vlaneseq }
  0x4a   : > { %760 = vsyncadd (%p1018_p8), [#allocation6], 4294964224  ;;  %371 = vmatprep.subr.bf16.mxu0 %v621_v0  ;;  %v626_v3 = vld [vmem:[#allocation5 + $0x60] ss:$8 sps:$4 sm:$0xff]   ;;  %v627_v4 = vld [vmem:[#allocation5 + $0x54] ss:$8 sps:$4 sm:$0xff]  }
  0x4b   : > { %372 = vmatpush1.bf16.msra.mxu0 %v623_v1  ;;  %v629_v5 = vld [vmem:[#allocation5 + $0x50] ss:$8 sps:$4 sm:$0xff]   ;;  %v630_v6 = vld [vmem:[#allocation5 + $0x44] ss:$8 sps:$4 sm:$0xff]   ;;  %v632_v7 = vld [vmem:[#allocation5 + $0x40] ss:$8 sps:$4 sm:$0xff]  }
  0x4c   : > { %373 = vmatprep.subr.bf16.mxu0 %v624_v2  ;;  %v633_v8 = vld [vmem:[#allocation5 + $0x34] ss:$8 sps:$4 sm:$0xff]   ;;  %v635_v9 = vld [vmem:[#allocation5 + $0x30] ss:$8 sps:$4 sm:$0xff]   ;;  %v636_v10 = vld [vmem:[#allocation5 + $0x24] ss:$8 sps:$4 sm:$0xff]  }
  0x4d   : > { %v206_v11 = vld [vmem:[%s932_s29 + $0x8] sm:$0xff]  ;;  %v208_v12 = vld [vmem:[%s932_s29 + $0x18] sm:$0xff]  ;;  %vm367_vm0 = vcmask 523264   ;;  %v205_v27 = vld [vmem:[%s932_s29] sm:$0xff]  ;;  %v238_v31 = vshrl.u32 %v237_v30, 7  ;;  %s203_s17 = scalar_lea.vmem [#allocation7], %s523_s27 }
  0x4e   : > { %v210_v13 = vpack.c.bf16 %v208_v12, %v206_v11  ;;  %v638_v14 = vld [vmem:[#allocation5 + $0x20] ss:$8 sps:$4 sm:$0xff]   ;;  %v639_v15 = vld [vmem:[#allocation5 + $0x14] ss:$8 sps:$4 sm:$0xff]   ;;  %v641_v16 = vld [vmem:[#allocation5 + $0x10] ss:$8 sps:$4 sm:$0xff]  }
  0x4f   : > { %374 = vmatpush1.bf16.msra.mxu0 %v626_v3  ;;  %v642_v17 = vld [vmem:[#allocation5 + $0x4] ss:$8 sps:$4 sm:$0xff]   ;;  %v644_v18 = vld [vmem:[#allocation5] ss:$8 sps:$4 sm:$0xff]   ;;  %v645_v19 = vld [vmem:[#allocation5 + $0xb4] ss:$8 sps:$4 sm:$0xff]  }
  0x50   : > { %375 = vmatprep.subr.bf16.mxu0 %v627_v4  ;;  %550 = vmatprep.mubr.msk.bf16.mxu0 %vm367_vm0, %v210_v13  ;;  %v647_v20 = vld [vmem:[#allocation5 + $0xb0] ss:$8 sps:$4 sm:$0xff]   ;;  %v648_v21 = vld [vmem:[#allocation5 + $0xa4] ss:$8 sps:$4 sm:$0xff]   ;;  %v650_v22 = vld [vmem:[#allocation5 + $0xa0] ss:$8 sps:$4 sm:$0xff]  }
  0x51   : > { %v651_v23 = vld [vmem:[#allocation5 + $0x94] ss:$8 sps:$4 sm:$0xff]   ;;  %v653_v24 = vld [vmem:[#allocation5 + $0x90] ss:$8 sps:$4 sm:$0xff]   ;;  %v654_v25 = vld [vmem:[#allocation5 + $0x84] ss:$8 sps:$4 sm:$0xff]  }
  0x52   : > { %v656_v26 = vld [vmem:[#allocation5 + $0x80] ss:$8 sps:$4 sm:$0xff]   ;;  %v207_v28 = vld [vmem:[%s932_s29 + $0x10] sm:$0xff]  ;;  %v239_v32 = vsub.s32 0, %v238_v31  ;;  %v243_v34 = vsub.s32 1, %v238_v31  ;;  %s432_s22 = sshll.u32 %s203_s17, 4  ;;  %s952_s22 = int_to_ptr.vmem [resolvable:$true] %s432_s22 }
  0x53   : > { %376 = vmatpush1.bf16.msra.mxu0 %v629_v5  ;;  %v209_v29 = vpack.c.bf16 %v207_v28, %v205_v27  ;;  %v235_v33 = vld [vmem:[%s1002_s2] sm:$0x3]  ;;  %s557_s23 = sshll.u32 %s831_s16, 9  ;;  %s419_s7 = scalar_lea.sflag [#allocation4], %s926_s26 }
  0x54   : > { %377 = vmatprep.subr.bf16.mxu0 %v630_v6  ;;  %v240_v35 = vrot.slane %v235_v33, %v239_v32  ;;  %v244_v36 = vrot.slane %v235_v33, %v243_v34  ;;  %s957_s4 = scalar_lea.hbm %s1003_s3, %s557_s23  ;;  %s711_s8 = scalar_lea.vmem %s952_s22, 512 }
  0x55   : > { %p712_p3 = scmp.ne.s32.totalorder %s952_s22, %s711_s8  ;;  %p1019_p11 = scmp.ne.s32.totalorder %s1013_s6, 0 }
  0x56   : > { %s787_s16 = smov [#allocation7]  }
  0x57   : > { %378 = vmatpush1.bf16.msra.mxu0 %v632_v7  ;;  %p713_p7 = pnand %p712_p3, %p1019_p11  ;;  %s715_s9 = sshll.u32 %s787_s16, 4  ;;  %s716_s9 = int_to_ptr.vmem [resolvable:$false] %s715_s9 }
  0x58   : > { %379 = vmatprep.subr.bf16.mxu0 %v633_v8  ;;  %s717_s10 = scalar_lea.vmem %s716_s9, 1024  ;;  %p718_p10 = scmp.lt.s32.totalorder %s952_s22, %s716_s9 }
  0x59   : > { %p714_p12 = pneg %p713_p7  ;;  %p719_p2 = scmp.lt.s32.totalorder %s717_s10, %s711_s8 }
  0x5b   : > { %380 = vmatpush1.bf16.msra.mxu0 %v635_v9  ;;  %p720_p13 = por %p719_p2, %p718_p10 }
  0x5c   : > { %381 = vmatprep.subr.bf16.mxu0 %v636_v10 }
  0x5d   : > { %p721_p0 = pnand %p720_p13, %p714_p12 }
  0x5f   : > { %382 = vmatpush1.bf16.msra.mxu0 %v638_v14 }
  0x60   : > { %383 = vmatprep.subr.bf16.mxu0 %v639_v15 }
  0x63   : > { %384 = vmatpush1.bf16.msra.mxu0 %v641_v16 }
  0x64   : > { %385 = vmatprep.subr.bf16.mxu0 %v642_v17 }
  0x67   : > { %386 = vmatpush1.bf16.msra.mxu0 %v644_v18 }
  0x68   : > { %395 = vmatprep.subr.bf16.mxu0 %v645_v19 }
  0x6b   : > { %396 = vmatpush2.bf16.msra.mxu0 %v647_v20 }
  0x6c   : > { %397 = vmatprep.subr.bf16.mxu0 %v648_v21 }
  0x6f   : > { %398 = vmatpush2.bf16.msra.mxu0 %v650_v22 }
  0x70   : > { %399 = vmatprep.subr.bf16.mxu0 %v651_v23 }
  0x73   : > { %400 = vmatpush2.bf16.msra.mxu0 %v653_v24 }
  0x74   : > { %401 = vmatprep.subr.bf16.mxu0 %v654_v25 }
  0x77   : > { %402 = vmatpush2.bf16.msra.mxu0 %v656_v26 }
  0x7a   : > { %404 = vmatmul.mubr.bf16.vlgmr.msra.gmra.mxu0 %v209_v29 }
 0x13a   : > { %v405_v37 = vpop.f32.mrf.mxu0 }
 0x13b   : > { %v406_v38 = vadd.f32 %v405_v37, %v240_v35 }
 0x13c   : > { %v407_v39 = vpop.f32.mrf.mxu0 }
 0x13d   : > { %414 = vst [vmem:[%s203_s17] sm:$0xff] %v406_v38  ;;  %v408_v40 = vadd.f32 %v407_v39, %v244_v36 }
 0x13e   : > { %v409_v41 = vpop.f32.mrf.mxu0 }
 0x13f   : > { %415 = vst [vmem:[%s203_s17 + $0x8] sm:$0xff] %v408_v40  ;;  %v410_v42 = vadd.f32 %v409_v41, %v240_v35 }
 0x140   : > { %v411_v43 = vpop.f32.mrf.mxu0 }
 0x141   : > { %416 = vst [vmem:[%s203_s17 + $0x10] sm:$0xff] %v410_v42  ;;  %v412_v44 = vadd.f32 %v411_v43, %v244_v36 }
 0x143   : > { %417 = vst [vmem:[%s203_s17 + $0x18] sm:$0xff] %v412_v44 }
 0x144   : > { %724 = shalt.err (!%p721_p0)
}
 0x145   : > { %s725_s11 = scalar_lea.hbm %s957_s4, 512  ;;  %s729_s28 = scalar_lea.hbm %s1003_s3, 1024 }
 0x146   : > { %p726_p5 = scmp.ne.s32.totalorder %s957_s4, %s725_s11  ;;  %p730_p4 = scmp.lt.s32.totalorder %s957_s4, %s1003_s3 }
 0x147   : > { %p731_p6 = scmp.lt.s32.totalorder %s729_s28, %s725_s11 }
 0x148   : > { %p727_p9 = pnand %p726_p5, %p1019_p11 }
 0x149   : > { %p732_p8 = por %p731_p6, %p730_p4 }
 0x14a   : > { %p728_p1 = pneg %p727_p9 }
 0x14c   : > { %p733_p3 = pnand %p732_p8, %p728_p1 }
 0x14e   : > { %736 = shalt.err (!%p733_p3)
}
 0x14f   : > { %s788_s20 = smov 256   ;;  %s789_s17 = smov 16  }
 0x150   : > { %564 = dma.vmem_to_hbm [thread:$0]  (%p1019_p11), %s952_s22, 512, %s957_s4, %s419_s7, %s788_s20, %s788_s20, %s789_s17  }
 0x151 PF: > { %s447_s23 = sand.u32 1, %s767_s12   ;;  %p1020_p7 = scmp.ne.s32.totalorder %s1009_s19, 0 }
 0x152   : > { %p1021_p12 = scmp.ge.s32.totalorder %s779_s15, 2  ;;  %s448_s25 = scalar_lea.sflag [#allocation4], %s447_s23 }
 0x154   : > { %p575_p10 = pnand %p1021_p12, %p1020_p7 }
 0x156   : > { %p576_p2 = pneg %p575_p10 }
 0x158   : > { %762 = dma.done.wait (%p576_p2), %s448_s25, 512  }
 0x159   : > { %764 = vsyncadd (%p576_p2), %s448_s25, 4294966784  ;;  %p17_p13 = scmp.ge.s32.totalorder %s864_s24, 4   ;;  %s1022_s12 = smov %s771_s13 }
 0x15a   : > { %s1023_s13 = smov %s775_s14  ;;  %s1024_s14 = smov %s881_s5 }
 0x15b   : > { %s1025_s15 = smov %s864_s24  ;;  %19 = sbr.rel (!%p17_p13) target bundleno = 6 (0x6), region = 81 }
 0x160   :  { %453 = vsyncpa [#allocation3], 1 }
 0x161   :  { %455 = vsyncpa [#allocation3 + $0x1], 1 }
 0x162   :  { %456 = vsyncpa [#allocation6], 1 }
 0x163   :  { %457 = vsyncpa [#allocation4], 1 }
 0x164   :  { %459 = vsyncpa [#allocation4 + $0x1], 1 }

</bundles_post_ra>
